<compile_context>
chip_gen: v6e
topology: v6e:2x2x1
jax: 0.10.0
libtpu: 0.0.40
codegen_flags: <defaults>
</compile_context>

<pallas_src>
import jax
import jax.numpy as jnp
from jax.experimental import pallas as pl
from jax.experimental.pallas import tpu as pltpu


def _round_up(x, m):
    return (x + m - 1) // m * m


def _choose_batch_tile(batch, max_tile=512, min_steps=2):
    """Pick a batch tile: large enough to amortize per-step overhead, but keep
    >= min_steps grid steps (when batch allows) so v7x's 2 TCs both get work."""
    b8 = _round_up(max(batch, 1), 8)
    steps = max(pl.cdiv(b8, max_tile), min_steps if b8 > 8 else 1)
    tb = _round_up(pl.cdiv(b8, steps), 8)
    b_pad = _round_up(b8, tb)
    return tb, b_pad


def _fusion_kernel(x_ref, wlow_ref, wav_ref, wfa_ref, wft_ref, wc_ref,
                   bias_ref, out_ref):
    f32 = jnp.float32
    bf16 = jnp.bfloat16
    H = wfa_ref.shape[0]          # hidden_dim
    c_pad = wc_ref.shape[1]       # lane-dense classifier width (128)

    # Packed biases: row 0 = low-level (3H), row 1 = av fusion (H),
    # row 2 = final fusion (H), row 3 = classifier (c_pad). Row-aligned static
    # slices of a VMEM-resident operand are free.
    b_low = bias_ref[0:1, :3 * H]
    b_av = bias_ref[1:2, :H]
    b_fin = bias_ref[2:3, :H]
    b_cls = bias_ref[3:4, :c_pad]

    # Stage 1: the three per-modality Linear+ReLU layers as ONE block-diagonal
    # matmul. Result lanes: [audio_low | visual_low | text_low]  (TB, 3H).
    # TODO(synk): Dropout(0.2) after each ReLU is training-only; eval-mode identity here.
    low = jnp.maximum(
        jnp.dot(x_ref[...], wlow_ref[...], preferred_element_type=f32)
        + b_low, 0.0)
    low_bf = low.astype(bf16)     # single full-tile cast, reused by two dots

    # Stage 2: audio_visual_fusion. wav is zero-padded along K to 3H so the
    # dot consumes all of `low` — no lane slicing (text rows multiply by 0).
    av = jnp.maximum(
        jnp.dot(low_bf, wav_ref[...], preferred_element_type=f32)
        + b_av, 0.0)

    # Stage 3: final_fusion on cat([av, text_low]) expressed as two dots that
    # accumulate in f32 (wft is zero everywhere except the text_low K-rows).
    fin = jnp.maximum(
        jnp.dot(av.astype(bf16), wfa_ref[...], preferred_element_type=f32)
        + jnp.dot(low_bf, wft_ref[...], preferred_element_type=f32)
        + b_fin, 0.0)

    # Stage 4: classifier into a lane-dense 128-wide bf16 slab (unmasked vst).
    out_ref[...] = (
        jnp.dot(fin.astype(bf16), wc_ref[...], preferred_element_type=f32)
        + b_cls
    ).astype(out_ref.dtype)


def hierarchical_fusion_forward(audio, visual, text, packed, *,
                                max_block_b=512, slice_output=True):
    """Runs the fused forward pass.

    Returns (B, num_classes) bf16 logits by default; with slice_output=False
    returns the padded, lane-dense (b_pad, 128) bf16 slab (cheaper to hand to
    downstream kernels directly)."""
    B = audio.shape[0]
    num_classes = packed["num_classes"]

    # Concat + bf16 cast + batch pad stay in one small XLA fusion; activations
    # enter the kernel already in MXU operand dtype.
    x = jnp.concatenate([audio, visual, text], axis=-1).astype(jnp.bfloat16)
    f_in = x.shape[1]

    tb, b_pad = _choose_batch_tile(B, max_block_b)
    if b_pad != B:
        x = jnp.pad(x, ((0, b_pad - B), (0, 0)))

    c_pad = packed["wc"].shape[1]

    weights = (packed["wlow"], packed["wav"], packed["wfa"],
               packed["wft"], packed["wc"], packed["bias"])

    def const_spec(a):
        return pl.BlockSpec(a.shape, lambda i: (0,) * a.ndim)

    out = pl.pallas_call(
        _fusion_kernel,
        out_shape=jax.ShapeDtypeStruct((b_pad, c_pad), jnp.bfloat16),
        grid=(b_pad // tb,),
        in_specs=[pl.BlockSpec((tb, f_in), lambda i: (i, 0))]
                 + [const_spec(w) for w in weights],
        out_specs=pl.BlockSpec((tb, c_pad), lambda i: (i, 0)),
        compiler_params=pltpu.CompilerParams(
            dimension_semantics=("parallel",)),
    )(x, *weights)

    if slice_output:
        return out[:B, :num_classes]
    return out


def init_params(key, audio_dim, visual_dim, text_dim, hidden_dim, num_classes):
    """Deterministic synthetic parameters (raw, module-structured, f32)."""
    ks = jax.random.split(key, 6)

    def lin(k, fan_in, fan_out):
        w = jax.random.normal(k, (fan_in, fan_out), jnp.float32) / jnp.sqrt(fan_in)
        b = jnp.full((1, fan_out), 0.01, jnp.float32)
        return w, b

    wa, ba = lin(ks[0], audio_dim, hidden_dim)
    wv, bv = lin(ks[1], visual_dim, hidden_dim)
    wt, bt = lin(ks[2], text_dim, hidden_dim)
    wav, bav = lin(ks[3], 2 * hidden_dim, hidden_dim)
    wf, bf = lin(ks[4], 2 * hidden_dim, hidden_dim)
    wc, bc = lin(ks[5], hidden_dim, num_classes)
    return dict(wa=wa, ba=ba, wv=wv, bv=bv, wt=wt, bt=bt,
                wav=wav, bav=bav, wf=wf, bf=bf, wc=wc, bc=bc)


def pack_params(p, audio_dim, visual_dim, text_dim, hidden_dim, num_classes):
    """Kernel-side parameter layout: block-diagonal low-level weight, fusion
    weights zero-padded along K (so no in-kernel lane slicing), classifier
    padded to 128 lanes, all matmul weights bf16, biases packed into (4, 128)."""
    H = hidden_dim
    f_in = audio_dim + visual_dim + text_dim
    bf16 = jnp.bfloat16

    # Block-diagonal low-level projection: x(B, f_in) -> [a_low | v_low | t_low].
    wlow = jnp.zeros((f_in, 3 * H), jnp.float32)
    wlow = wlow.at[:audio_dim, :H].set(p["wa"])
    wlow = wlow.at[audio_dim:audio_dim + visual_dim, H:2 * H].set(p["wv"])
    wlow = wlow.at[audio_dim + visual_dim:, 2 * H:].set(p["wt"])

    # audio_visual_fusion weight, zero-padded along K to consume the full
    # packed `low` (text K-rows are exact zeros on the MXU).
    wav_p = jnp.zeros((3 * H, H), jnp.float32).at[:2 * H, :].set(p["wav"])

    # final_fusion split: av part (K=H) + text part zero-padded to K=3H.
    wfa = p["wf"][:H, :]
    wft = jnp.zeros((3 * H, H), jnp.float32).at[2 * H:, :].set(p["wf"][H:, :])

    c_pad = _round_up(num_classes, 128)
    wc_pad = jnp.zeros((H, c_pad), jnp.float32).at[:, :num_classes].set(p["wc"])

    # All biases packed into one f32 array, one bias per row, lane-0 aligned.
    bias_w = _round_up(max(3 * H, c_pad), 128)
    bias = jnp.zeros((4, bias_w), jnp.float32)
    bias = bias.at[0, :H].set(p["ba"][0])
    bias = bias.at[0, H:2 * H].set(p["bv"][0])
    bias = bias.at[0, 2 * H:3 * H].set(p["bt"][0])
    bias = bias.at[1, :H].set(p["bav"][0])
    bias = bias.at[2, :H].set(p["bf"][0])
    bias = bias.at[3, :num_classes].set(p["bc"][0])

    return dict(
        wlow=wlow.astype(bf16), wav=wav_p.astype(bf16),
        wfa=wfa.astype(bf16), wft=wft.astype(bf16),
        wc=wc_pad.astype(bf16), bias=bias,
        hidden_dim=H, num_classes=num_classes,
    )


def reference_forward_f32(audio, visual, text, p):
    """Pure-f32 reference mirroring the PyTorch forward in eval mode."""
    relu = lambda z: jnp.maximum(z, 0.0)
    a = relu(audio @ p["wa"] + p["ba"])
    v = relu(visual @ p["wv"] + p["bv"])
    t = relu(text @ p["wt"] + p["bt"])
    av = relu(jnp.concatenate([a, v], -1) @ p["wav"] + p["bav"])
    ff = relu(jnp.concatenate([av, t], -1) @ p["wf"] + p["bf"])
    return ff @ p["wc"] + p["bc"]


def reference_forward_matched(audio, visual, text, p):
    """Reference with the kernel's numerics (bf16 matmul operands, f32
    accumulation and bias/ReLU) but the original module structure."""
    bf16 = jnp.bfloat16
    f32 = jnp.float32

    def dot(x, w):
        return jnp.dot(x.astype(bf16), w.astype(bf16), preferred_element_type=f32)

    relu = lambda z: jnp.maximum(z, 0.0)
    a = relu(dot(audio, p["wa"]) + p["ba"])
    v = relu(dot(visual, p["wv"]) + p["bv"])
    t = relu(dot(text, p["wt"]) + p["bt"])
    av = relu(dot(jnp.concatenate([a, v], -1), p["wav"]) + p["bav"])
    ff = relu(dot(jnp.concatenate([av, t], -1), p["wf"]) + p["bf"])
    return dot(ff, p["wc"]) + p["bc"]


if __name__ == "__main__":
    B = 256
    audio_dim, visual_dim, text_dim = 16, 32, 24
    hidden_dim, num_classes = 32, 8

    key = jax.random.PRNGKey(0)
    k_a, k_v, k_t, k_p = jax.random.split(key, 4)

    audio = jax.random.normal(k_a, (B, audio_dim), jnp.float32)
    visual = jax.random.normal(k_v, (B, visual_dim), jnp.float32)
    text = jax.random.normal(k_t, (B, text_dim), jnp.float32)

    raw = init_params(k_p, audio_dim, visual_dim, text_dim, hidden_dim, num_classes)
    packed = pack_params(raw, audio_dim, visual_dim, text_dim, hidden_dim, num_classes)

    out = hierarchical_fusion_forward(audio, visual, text, packed)
    out = jax.block_until_ready(out)
    assert out.shape == (B, num_classes)
    out_f32 = out.astype(jnp.float32)

    # Tight check vs matched bf16-operand numerics (kernel stores bf16 logits).
    ref_bf = reference_forward_matched(audio, visual, text, raw)
    err_bf = float(jnp.max(jnp.abs(out_f32 - ref_bf)))
    assert jnp.allclose(out_f32, ref_bf, atol=2e-2, rtol=2e-2), err_bf

    # Looser check vs the true f32 PyTorch-equivalent model (documents the
    # bf16-operand / bf16-output divergence from an f32 reference).
    ref_f32 = reference_forward_f32(audio, visual, text, raw)
    err_f32 = float(jnp.max(jnp.abs(out_f32 - ref_f32)))
    assert jnp.allclose(out_f32, ref_f32, atol=1e-1, rtol=1e-1), err_f32

    print("KERNEL_OK")
</pallas_src>

<mosaic_0001>
module attributes {stable_mosaic.version = 11 : i64} {
  func.func @_fusion_kernel(%arg0: i32, %arg1: memref<128x72xbf16, #tpu.memory_space<vmem>>, %arg2: memref<72x96xbf16, #tpu.memory_space<vmem>>, %arg3: memref<96x32xbf16, #tpu.memory_space<vmem>>, %arg4: memref<32x32xbf16, #tpu.memory_space<vmem>>, %arg5: memref<96x32xbf16, #tpu.memory_space<vmem>>, %arg6: memref<32x128xbf16, #tpu.memory_space<vmem>>, %arg7: memref<4x128xf32, #tpu.memory_space<vmem>>, %arg8: memref<128x128xbf16, #tpu.memory_space<vmem>>) attributes {dimension_semantics = [#tpu.dimension_semantics<parallel>], iteration_bounds = array<i64: 2>, scalar_prefetch = 0 : i64, scratch_operands = 0 : i64, tpu.core_type = #tpu.core_type<tc>, window_params = [{transform_indices = @transform_0, window_bounds = array<i64: 128, 72>}, {pipeline_mode = #tpu.pipeline_mode<synchronous>, transform_indices = @transform_1, window_bounds = array<i64: 72, 96>}, {pipeline_mode = #tpu.pipeline_mode<synchronous>, transform_indices = @transform_2, window_bounds = array<i64: 96, 32>}, {pipeline_mode = #tpu.pipeline_mode<synchronous>, transform_indices = @transform_3, window_bounds = array<i64: 32, 32>}, {pipeline_mode = #tpu.pipeline_mode<synchronous>, transform_indices = @transform_4, window_bounds = array<i64: 96, 32>}, {pipeline_mode = #tpu.pipeline_mode<synchronous>, transform_indices = @transform_5, window_bounds = array<i64: 32, 128>}, {pipeline_mode = #tpu.pipeline_mode<synchronous>, transform_indices = @transform_6, window_bounds = array<i64: 4, 128>}, {transform_indices = @transform_7, window_bounds = array<i64: 128, 128>}]} {
    %c0 = arith.constant 0 : index
    %c0_0 = arith.constant 0 : index
    %0 = vector.load %arg7[%c0, %c0_0] : memref<4x128xf32, #tpu.memory_space<vmem>>, vector<1x96xf32>
    %c1 = arith.constant 1 : index
    %c0_1 = arith.constant 0 : index
    %1 = vector.load %arg7[%c1, %c0_1] : memref<4x128xf32, #tpu.memory_space<vmem>>, vector<1x32xf32>
    %c2 = arith.constant 2 : index
    %c0_2 = arith.constant 0 : index
    %2 = vector.load %arg7[%c2, %c0_2] : memref<4x128xf32, #tpu.memory_space<vmem>>, vector<1x32xf32>
    %c3 = arith.constant 3 : index
    %c0_3 = arith.constant 0 : index
    %3 = vector.load %arg7[%c3, %c0_3] : memref<4x128xf32, #tpu.memory_space<vmem>>, vector<1x128xf32>
    %c0_4 = arith.constant 0 : index
    %c0_5 = arith.constant 0 : index
    %4 = vector.load %arg1[%c0_4, %c0_5] : memref<128x72xbf16, #tpu.memory_space<vmem>>, vector<128x72xbf16>
    %c0_6 = arith.constant 0 : index
    %c0_7 = arith.constant 0 : index
    %5 = vector.load %arg2[%c0_6, %c0_7] : memref<72x96xbf16, #tpu.memory_space<vmem>>, vector<72x96xbf16>
    %cst = arith.constant dense<0.000000e+00> : vector<128x96xf32>
    %6 = tpu.matmul %4, %5, %cst {dimension_numbers = #tpu.dot_dimension_numbers<[1], [0], [0], [1], [0, 0, 1, 1], [], []>} : vector<128x72xbf16>, vector<72x96xbf16>, vector<128x96xf32> -> vector<128x96xf32>
    %7 = vector.broadcast %0 : vector<1x96xf32> to vector<128x96xf32>
    %8 = arith.addf %6, %7 : vector<128x96xf32>
    %cst_8 = arith.constant 0.000000e+00 : f32
    %9 = vector.broadcast %cst_8 : f32 to vector<128x96xf32>
    %10 = arith.maximumf %8, %9 : vector<128x96xf32>
    %11 = arith.truncf %10 : vector<128x96xf32> to vector<128x96xbf16>
    %c0_9 = arith.constant 0 : index
    %c0_10 = arith.constant 0 : index
    %12 = vector.load %arg3[%c0_9, %c0_10] : memref<96x32xbf16, #tpu.memory_space<vmem>>, vector<96x32xbf16>
    %cst_11 = arith.constant dense<0.000000e+00> : vector<128x32xf32>
    %13 = tpu.matmul %11, %12, %cst_11 {dimension_numbers = #tpu.dot_dimension_numbers<[1], [0], [0], [1], [0, 0, 1, 1], [], []>} : vector<128x96xbf16>, vector<96x32xbf16>, vector<128x32xf32> -> vector<128x32xf32>
    %14 = vector.broadcast %1 : vector<1x32xf32> to vector<128x32xf32>
    %15 = arith.addf %13, %14 : vector<128x32xf32>
    %cst_12 = arith.constant 0.000000e+00 : f32
    %16 = vector.broadcast %cst_12 : f32 to vector<128x32xf32>
    %17 = arith.maximumf %15, %16 : vector<128x32xf32>
    %18 = arith.truncf %17 : vector<128x32xf32> to vector<128x32xbf16>
    %c0_13 = arith.constant 0 : index
    %c0_14 = arith.constant 0 : index
    %19 = vector.load %arg4[%c0_13, %c0_14] : memref<32x32xbf16, #tpu.memory_space<vmem>>, vector<32x32xbf16>
    %cst_15 = arith.constant dense<0.000000e+00> : vector<128x32xf32>
    %20 = tpu.matmul %18, %19, %cst_15 {dimension_numbers = #tpu.dot_dimension_numbers<[1], [0], [0], [1], [0, 0, 1, 1], [], []>} : vector<128x32xbf16>, vector<32x32xbf16>, vector<128x32xf32> -> vector<128x32xf32>
    %c0_16 = arith.constant 0 : index
    %c0_17 = arith.constant 0 : index
    %21 = vector.load %arg5[%c0_16, %c0_17] : memref<96x32xbf16, #tpu.memory_space<vmem>>, vector<96x32xbf16>
    %cst_18 = arith.constant dense<0.000000e+00> : vector<128x32xf32>
    %22 = tpu.matmul %11, %21, %cst_18 {dimension_numbers = #tpu.dot_dimension_numbers<[1], [0], [0], [1], [0, 0, 1, 1], [], []>} : vector<128x96xbf16>, vector<96x32xbf16>, vector<128x32xf32> -> vector<128x32xf32>
    %23 = arith.addf %20, %22 : vector<128x32xf32>
    %24 = vector.broadcast %2 : vector<1x32xf32> to vector<128x32xf32>
    %25 = arith.addf %23, %24 : vector<128x32xf32>
    %cst_19 = arith.constant 0.000000e+00 : f32
    %26 = vector.broadcast %cst_19 : f32 to vector<128x32xf32>
    %27 = arith.maximumf %25, %26 : vector<128x32xf32>
    %28 = arith.truncf %27 : vector<128x32xf32> to vector<128x32xbf16>
    %c0_20 = arith.constant 0 : index
    %c0_21 = arith.constant 0 : index
    %29 = vector.load %arg6[%c0_20, %c0_21] : memref<32x128xbf16, #tpu.memory_space<vmem>>, vector<32x128xbf16>
    %cst_22 = arith.constant dense<0.000000e+00> : vector<128x128xf32>
    %30 = tpu.matmul %28, %29, %cst_22 {dimension_numbers = #tpu.dot_dimension_numbers<[1], [0], [0], [1], [0, 0, 1, 1], [], []>} : vector<128x32xbf16>, vector<32x128xbf16>, vector<128x128xf32> -> vector<128x128xf32>
    %31 = vector.broadcast %3 : vector<1x128xf32> to vector<128x128xf32>
    %32 = arith.addf %30, %31 : vector<128x128xf32>
    %33 = arith.truncf %32 : vector<128x128xf32> to vector<128x128xbf16>
    %c0_23 = arith.constant 0 : index
    %c0_24 = arith.constant 0 : index
    %34 = vector.load %arg8[%c0_23, %c0_24] : memref<128x128xbf16, #tpu.memory_space<vmem>>, vector<128x128xbf16>
    tpu.vector_store %arg8[%c0_23, %c0_24], %33 {strides = array<i32>} : memref<128x128xbf16, #tpu.memory_space<vmem>>, vector<128x128xbf16>,
    return
  }
  func.func @transform_0(%arg0: i32) -> (i32, i32) {
    %c0_i32 = arith.constant 0 : i32
    %c0_i32_0 = arith.constant 0 : i32
    return %arg0, %c0_i32 : i32, i32
  }
  func.func @transform_1(%arg0: i32) -> (i32, i32) {
    %c0_i32 = arith.constant 0 : i32
    %c0_i32_0 = arith.constant 0 : i32
    %c0_i32_1 = arith.constant 0 : i32
    return %c0_i32, %c0_i32_0 : i32, i32
  }
  func.func @transform_2(%arg0: i32) -> (i32, i32) {
    %c0_i32 = arith.constant 0 : i32
    %c0_i32_0 = arith.constant 0 : i32
    %c0_i32_1 = arith.constant 0 : i32
    return %c0_i32, %c0_i32_0 : i32, i32
  }
  func.func @transform_3(%arg0: i32) -> (i32, i32) {
    %c0_i32 = arith.constant 0 : i32
    %c0_i32_0 = arith.constant 0 : i32
    %c0_i32_1 = arith.constant 0 : i32
    return %c0_i32, %c0_i32_0 : i32, i32
  }
  func.func @transform_4(%arg0: i32) -> (i32, i32) {
    %c0_i32 = arith.constant 0 : i32
    %c0_i32_0 = arith.constant 0 : i32
    %c0_i32_1 = arith.constant 0 : i32
    return %c0_i32, %c0_i32_0 : i32, i32
  }
  func.func @transform_5(%arg0: i32) -> (i32, i32) {
    %c0_i32 = arith.constant 0 : i32
    %c0_i32_0 = arith.constant 0 : i32
    %c0_i32_1 = arith.constant 0 : i32
    return %c0_i32, %c0_i32_0 : i32, i32
  }
  func.func @transform_6(%arg0: i32) -> (i32, i32) {
    %c0_i32 = arith.constant 0 : i32
    %c0_i32_0 = arith.constant 0 : i32
    %c0_i32_1 = arith.constant 0 : i32
    return %c0_i32, %c0_i32_0 : i32, i32
  }
  func.func @transform_7(%arg0: i32) -> (i32, i32) {
    %c0_i32 = arith.constant 0 : i32
    %c0_i32_0 = arith.constant 0 : i32
    return %arg0, %c0_i32 : i32, i32
  }
}

</mosaic_0001>

<bundles_post_ra>
// kernel: tpu_custom_call.1
= control target key start
LH: loop header
LB: loop body
LE: loop exit
PB: predicated region body
PF: predicated region fallthrough
CT: control target
= control target key end

     0   :  { %12 = vsyncpa [#allocation3], 0  ;;  %s2165_s0 = inlined_call_operand.vmem [shape: bf16[256,72], index: 0, kind: input, shape index: {}]   ;;  %s2166_s1 = inlined_call_operand.vmem [shape: bf16[72,96], index: 1, kind: input, shape index: {}]   ;;  %s2167_s2 = inlined_call_operand.vmem [shape: bf16[96,32], index: 2, kind: input, shape index: {}]   ;;  %s2168_s3 = inlined_call_operand.vmem [shape: bf16[32,32], index: 3, kind: input, shape index: {}]   ;;  %s2169_s4 = inlined_call_operand.vmem [shape: bf16[96,32], index: 4, kind: input, shape index: {}]   ;;  %s2170_s5 = inlined_call_operand.vmem [shape: bf16[32,128], index: 5, kind: input, shape index: {}]   ;;  %s2171_s6 = inlined_call_operand.vmem [shape: f32[4,128], index: 6, kind: input, shape index: {}]   ;;  %s2172_s7 = inlined_call_operand.hbm [shape: bf16[256,128], index: 7, kind: output, shape index: {}]  }
   0x1   :  { %14 = vsyncpa [#allocation3 + $0x1], 0  ;;  %s1888_s24 = smov 0   ;;  %s1890_s25 = smov 0  }
   0x2   :  { %s1892_s26 = smov 0   ;;  %s1894_s27 = smov 0  }
   0x3 LB: > { %s1909_s28 = sadd.s32 4294967295, %s1843_s27   ;;  %s1353_s29 = sadd.s32 4294967294, %s1843_s27   ;;  %s1843_s27 = sphi %s1894_s27, %s2178_s27   ;;  %s1839_s26 = sphi %s1892_s26, %s2177_s26   ;;  %s1835_s25 = sphi %s1890_s25, %s2176_s25   ;;  %s1831_s24 = sphi %s1888_s24, %s2175_s24  }
   0x4   : > { %s1913_s30 = sadd.s32 1, %s1843_s27   ;;  %s179_s8 = sadd.s32 1, %s1839_s26 }
   0x5   : > { %s176_s9 = ssub.s32 %s1843_s27, %s1913_s30  ;;  %p189_p0 = scmp.ne.s32.totalorder %s1839_s26, %s1835_s25 }
   0x6   : > { %p177_p1 = scmp.eq.s32.totalorder %s176_s9, 0  ;;  %p190_p2 = scmp.eq.s32.totalorder %s1909_s28, 1 }
   0x7   : > { %p195_p3 = scmp.ne.s32.totalorder %s1835_s25, %s1831_s24  ;;  %p196_p4 = scmp.eq.s32.totalorder %s1353_s29, 1 }
   0x8   : > { %s1924_s10 = scalar_select %p177_p1, %s1839_s26, %s179_s8  }
   0x9   : > { %p1926_p5 = por %p190_p2, %p189_p0  ;;  %p1930_p6 = por %p196_p4, %p195_p3 }
   0xa   : > { %p1356_p7 = scmp.ge.s32.totalorder %s1843_s27, 1  ;;  %p241_p8 = scmp.lt.s32.totalorder %s1843_s27, 3 }
   0xc   : > { %p242_p9 = pnand %p1356_p7, %p241_p8 }
   0xd   : > { %s1358_s17 = sshll.u32 (!%p242_p9), %s1909_s28, 4  ;;  %s270_s29 = sand.u32 (!%p242_p9), 1, %s1835_s25  }
   0xe   : > { %245 = sbr.rel (%p242_p9) target bundleno = 901 (0x385), region = 48  ;;  %p274_p10 = scmp.lt.s32.totalorder (!%p242_p9), %s1358_s17, 31 }
   0xf   : > { %s1357_s14 = sshll.u32 (!%p242_p9), %s270_s29, 6  ;;  %s1470_s16 = sshll.u32 (!%p242_p9), %s1909_s28, 10 }
  0x10   : > { %s2104_s15 = scalar_lea.vmem (!%p242_p9), [#allocation2], %s1357_s14  ;;  %s2125_s28 = scalar_lea.sflag (!%p242_p9), [#allocation3], %s270_s29 }
  0x11   : > { %s1845_s21 = smov (!%p242_p9), [#allocation2]  }
  0x13   : > { %v1754_v0 = vld [vmem:[%s2166_s1 + $0x20] ss:$0 sps:$4 sm:$0xff]   ;;  %vm406_vm0 = vcmask 1043456   ;;  %v1755_v1 = vld [vmem:[%s2166_s1 + $0x18] sm:$0xff]   ;;  %v1756_v3 = vld [vmem:[%s2166_s1 + $0x10] sm:$0xff]   ;;  %s2180_s17 = smov (!%p274_p10, %s1358_s17), 31 }
  0x14   : > { %1711 = vmatprep.subr.msk.bf16.mxu0 %vm406_vm0, %v1754_v0  ;;  %v408_v2 = vsel %vm406_vm0, %v1754_v0, 0  ;;  %1712 = vmatprep.subr.msk.bf16.mxu1 %vm406_vm0, %v1754_v0  ;;  %v1757_v4 = vld [vmem:[%s2166_s1 + $0x8] sm:$0xff]   ;;  %s1359_s22 = sshll.u32 %s2180_s17, 2  ;;  %vm381_vm1 = vcmask 588800   ;;  %v1758_v6 = vld [vmem:[%s2166_s1] sm:$0xff]   ;;  %v1771_v15 = vld [vmem:[%s2167_s2 + $0x18] sm:$0xff]  }
  0x15   : > { %1580 = vmatpush3.bf16.msra.mxu0 %v408_v2  ;;  %1706 = vmatpush3.bf16.msra.mxu1 %v408_v2  ;;  %s1952_s8 = scalar_lea.vmem %s2165_s0, %s1359_s22  ;;  %v1767_v7 = vld [vmem:[%s2167_s2 + $0x28] sm:$0xff]   ;;  %v1769_v13 = vld [vmem:[%s2167_s2 + $0x20] sm:$0xff]   ;;  %v1772_v16 = vld [vmem:[%s2169_s4 + $0x18] sm:$0xff]   ;;  %vm583_vm2 = vcmask 785408   ;;  %vm890_vm3 = vcmask 261120   ;;  %s1291_s17 = sshll.u32 %s2104_s15, 4  ;;  %s2119_s17 = int_to_ptr.vmem [resolvable:$true] %s1291_s17 }
  0x16   : > { %1581 = vmatprep.subr.bf16.mxu0 %v1755_v1  ;;  %1702 = vmatprep.subr.bf16.mxu1 %v1755_v1  ;;  %v1759_v5 = vld [vmem:[%s1952_s8] sm:$0xff]   ;;  %v1768_v8 = vld [vmem:[%s2169_s4 + $0x28] sm:$0xff]   ;;  %v1765_v10 = vld [vmem:[%s1952_s8 + $0x30] sm:$0xff]   ;;  %s1783_s20 = scalar_lea.vmem %s2119_s17, 1024  ;;  %s1787_s22 = sshll.u32 %s1845_s21, 4  ;;  %s1788_s22 = int_to_ptr.vmem [resolvable:$false] %s1787_s22 }
  0x17   : > { %1589 = vmatprep.mubr.msk.bf16.mxu0 %vm381_vm1, %v1759_v5  ;;  %v1760_v9 = vld [vmem:[%s1952_s8 + $0x8] sm:$0xff]   ;;  %v1761_v11 = vld [vmem:[%s1952_s8 + $0x10] sm:$0xff]   ;;  %1601 = vmatprep.mubr.msk.bf16.mxu1 %vm381_vm1, %v1765_v10  ;;  %v1766_v12 = vld [vmem:[%s1952_s8 + $0x38] sm:$0xff]   ;;  %p1784_p11 = scmp.ne.s32.totalorder %s2119_s17, %s1783_s20  ;;  %s1789_s23 = scalar_lea.vmem %s1788_s22, 2048 }
  0x18   : > { %v1770_v14 = vld [vmem:[%s2169_s4 + $0x20] sm:$0xff]   ;;  %v1762_v17 = vld [vmem:[%s1952_s8 + $0x18] sm:$0xff]   ;;  %v1764_v19 = vld [vmem:[%s1952_s8 + $0x28] sm:$0xff]   ;;  %p1790_p0 = scmp.lt.s32.totalorder %s2119_s17, %s1788_s22  ;;  %p1791_p1 = scmp.lt.s32.totalorder %s1789_s23, %s1783_s20 }
  0x19   : > { %1582 = vmatpush3.bf16.msra.mxu0 %v1755_v1  ;;  %1707 = vmatpush3.bf16.msra.mxu1 %v1755_v1  ;;  %v1763_v18 = vld [vmem:[%s1952_s8 + $0x20] sm:$0xff]   ;;  %v1773_v20 = vld [vmem:[%s2167_s2 + $0x10] sm:$0xff]   ;;  %v1775_v22 = vld [vmem:[%s2167_s2 + $0x8] sm:$0xff]   ;;  %s2117_s8 = scalar_lea.hbm %s2172_s7, %s1470_s16  ;;  %p1785_p12 = pnand %p1784_p11, %p1926_p5 }
  0x1a   : > { %1583 = vmatprep.subr.bf16.mxu0 %v1756_v3  ;;  %1703 = vmatprep.subr.bf16.mxu1 %v1756_v3  ;;  %v1774_v21 = vld [vmem:[%s2169_s4 + $0x10] sm:$0xff]   ;;  %v1776_v23 = vld [vmem:[%s2169_s4 + $0x8] sm:$0xff]   ;;  %v1777_v24 = vld [vmem:[%s2167_s2] sm:$0xff]   ;;  %p1792_p2 = por %p1791_p1, %p1790_p0 }
  0x1b   : > { %v1778_v25 = vld [vmem:[%s2169_s4] sm:$0xff]   ;;  %v1779_v26 = vld [vmem:[%s2168_s3 + $0x8] sm:$0xff]   ;;  %p1786_p13 = pneg %p1785_p12 }
  0x1c   : > { %v2015_v29 = vld [vmem:[%s2171_s6] ss:$0 sm:$0xff] }
  0x1d   : > { %1584 = vmatpush3.bf16.msra.mxu0 %v1756_v3  ;;  %1708 = vmatpush3.bf16.msra.mxu1 %v1756_v3  ;;  %v1780_v48 = vld [vmem:[%s2168_s3] sm:$0xff]   ;;  %p1793_p3 = pnand %p1792_p2, %p1786_p13 }
  0x1e   : > { %1585 = vmatprep.subr.bf16.mxu0 %v1757_v4  ;;  %1704 = vmatprep.subr.bf16.mxu1 %v1757_v4 }
  0x21   : > { %1586 = vmatpush3.bf16.msra.mxu0 %v1757_v4  ;;  %1709 = vmatpush3.bf16.msra.mxu1 %v1757_v4 }
  0x22   : > { %1587 = vmatprep.subr.bf16.mxu0 %v1758_v6  ;;  %1705 = vmatprep.subr.bf16.mxu1 %v1758_v6 }
  0x25   : > { %1588 = vmatpush3.bf16.msra.mxu0 %v1758_v6  ;;  %1710 = vmatpush3.bf16.msra.mxu1 %v1758_v6 }
  0x26   : > { %1605 = vmatprep.subr.bf16.mxu1 %v1767_v7  ;;  %1633 = vmatprep.subr.bf16.mxu0 %v1768_v8 }
  0x28   : > { %1590 = vmatmul.mubr.msk.bf16.vlgmr.msra.gmra.mxu0 %vm381_vm1, %v1760_v9  ;;  %1602 = vmatmul.mubr.msk.bf16.vlgmr.msra.gmra.mxu1 %vm381_vm1, %v1766_v12 }
  0x29   : > { %1593 = vmatprep.mubr.msk.bf16.mxu0 %vm381_vm1, %v1761_v11  ;;  %1606 = vmatpush3.bf16.msra.mxu1 %v1767_v7 }
  0x2a   : > { %1634 = vmatpush3.bf16.msra.mxu0 %v1768_v8  ;;  %1607 = vmatprep.subr.bf16.mxu1 %v1769_v13 }
  0x2b   : > { %1635 = vmatprep.subr.bf16.mxu0 %v1770_v14 }
  0x2d   : > { %1608 = vmatpush3.bf16.msra.mxu1 %v1769_v13 }
  0x2e   : > { %1636 = vmatpush3.bf16.msra.mxu0 %v1770_v14  ;;  %1609 = vmatprep.subr.bf16.mxu1 %v1771_v15 }
  0x2f   : > { %1637 = vmatprep.subr.bf16.mxu0 %v1772_v16 }
  0x30   : > { %1594 = vmatmul.mubr.msk.bf16.gmra.mxu0 %vm381_vm1, %v1762_v17 }
  0x31   : > { %1597 = vmatprep.mubr.msk.bf16.mxu0 %vm381_vm1, %v1763_v18  ;;  %1610 = vmatpush3.bf16.msra.mxu1 %v1771_v15 }
  0x32   : > { %1638 = vmatpush3.bf16.msra.mxu0 %v1772_v16  ;;  %1611 = vmatprep.subr.bf16.mxu1 %v1773_v20 }
  0x33   : > { %1639 = vmatprep.subr.bf16.mxu0 %v1774_v21 }
  0x35   : > { %1612 = vmatpush3.bf16.msra.mxu1 %v1773_v20 }
  0x36   : > { %1640 = vmatpush3.bf16.msra.mxu0 %v1774_v21  ;;  %1613 = vmatprep.subr.bf16.mxu1 %v1775_v22  ;;  %v1781_v21 = vld [vmem:[%s2170_s5 + $0x8] sm:$0xff]  }
  0x37   : > { %1641 = vmatprep.subr.bf16.mxu0 %v1776_v23 }
  0x38   : > { %1598 = vmatmul.mubr.msk.bf16.gmra.mxu0 %vm381_vm1, %v1764_v19 }
  0x39   : > { %1614 = vmatpush3.bf16.msra.mxu1 %v1775_v22  ;;  %v1782_v22 = vld [vmem:[%s2170_s5] sm:$0xff]  }
  0x3a   : > { %1642 = vmatpush3.bf16.msra.mxu0 %v1776_v23  ;;  %1615 = vmatprep.subr.bf16.mxu1 %v1777_v24 }
  0x3b   : > { %1643 = vmatprep.subr.bf16.mxu0 %v1778_v25 }
  0x3d   : > { %1616 = vmatpush3.bf16.msra.mxu1 %v1777_v24 }
  0x3e   : > { %1644 = vmatpush3.bf16.msra.mxu0 %v1778_v25  ;;  %1661 = vmatprep.subr.bf16.mxu1 %v1779_v26  ;;  %v1382_v25 = vld [vmem:[%s2171_s6 + $0x1] ss:$0 sm:$0xff] }
  0x3f   : > { %1681 = vmatprep.subr.bf16.mxu0 %v1781_v21 }
  0xe8   : > { %v1591_v27 = vpop.f32.mrf.mxu0  ;;  %v1603_v31 = vpop.f32.mrf.mxu1 }
  0xe9   : > { %v453_v34 = vadd.f32 %v1591_v27, %v2015_v29  ;;  %v501_v15 = vadd.f32 %v1603_v31, %v2015_v29 }
  0xea   : > { %v444_v28 = vpop.f32.mrf.mxu0  ;;  %v492_v39 = vpop.f32.mrf.mxu1 }
  0xeb   : > { %v445_v32 = vadd.f32 %v2015_v29, %v444_v28  ;;  %v509_v42 = vmax.f32 %v453_v34, 0.0  ;;  %v493_v62 = vadd.f32 %v2015_v29, %v492_v39  ;;  %v521_v18 = vmax.f32 %v501_v15, 0.0 }
  0xec   : > { %v1592_v30 = vpop.f32.mrf.mxu0  ;;  %v1604_v47 = vpop.f32.mrf.mxu1 }
  0xed   : > { %v456_v33 = vadd.f32 %v1592_v30, %v2015_v29  ;;  %v507_v40 = vmax.f32 %v445_v32, 0.0  ;;  %v519_v6 = vmax.f32 %v493_v62, 0.0  ;;  %v504_v17 = vadd.f32 %v1604_v47, %v2015_v29 }
  0xee   : > { %v447_v35 = vpop.f32.mrf.mxu0  ;;  %v495_v56 = vpop.f32.mrf.mxu1 }
  0xef   : > { %v448_v36 = vadd.f32 %v2015_v29, %v447_v35  ;;  %v510_v37 = vmax.f32 %v456_v33, 0.0  ;;  %v496_v63 = vadd.f32 %v2015_v29, %v495_v56  ;;  %v522_v19 = vmax.f32 %v504_v17, 0.0 }
  0xf0   : > { %v1595_v38 = vpop.f32.mrf.mxu0 }
  0xf1   : > { %v508_v41 = vmax.f32 %v448_v36, 0.0  ;;  %v524_v45 = vpack.c.bf16 %v510_v37, %v509_v42  ;;  %v469_v51 = vadd.f32 %v1595_v38, %v2015_v29  ;;  %v520_v8 = vmax.f32 %v496_v63, 0.0 }
  0xf2   : > { %v460_v43 = vpop.f32.mrf.mxu0  ;;  %v530_v20 = vpack.c.bf16 %v522_v19, %v521_v18 }
  0xf3   : > { %v523_v44 = vpack.c.bf16 %v508_v41, %v507_v40  ;;  %v461_v49 = vadd.f32 %v2015_v29, %v460_v43  ;;  %v513_v59 = vmax.f32 %v469_v51, 0.0  ;;  %v529_v14 = vpack.c.bf16 %v520_v8, %v519_v6 }
  0xf4   : > { %v1596_v46 = vpop.f32.mrf.mxu0 }
  0xf5   : > { %v472_v50 = vadd.f32 %v1596_v46, %v2015_v29  ;;  %1617 = vmatprep.mubr.msk.bf16.mxu1 %vm583_vm2, %v523_v44  ;;  %1645 = vmatprep.mubr.msk.bf16.mxu0 %vm583_vm2, %v523_v44  ;;  %v511_v57 = vmax.f32 %v461_v49, 0.0 }
  0xf6   : > { %v463_v52 = vpop.f32.mrf.mxu0  ;;  %1618 = vmatmul.mubr.msk.bf16.vlgmr.msra.gmra.mxu1 %vm583_vm2, %v524_v45  ;;  %1646 = vmatmul.mubr.msk.bf16.vlgmr.msra.gmra.mxu0 %vm583_vm2, %v524_v45 }
  0xf7   : > { %v464_v53 = vadd.f32 %v2015_v29, %v463_v52  ;;  %1662 = vmatpush3.bf16.msra.mxu1 %v1779_v26  ;;  %v514_v54 = vmax.f32 %v472_v50, 0.0  ;;  %1682 = vmatpush3.bf16.msra.mxu0 %v1781_v21 }
  0xf8   : > { %v1599_v55 = vpop.f32.mrf.mxu0  ;;  %1663 = vmatprep.subr.bf16.mxu1 %v1780_v48  ;;  %1683 = vmatprep.subr.bf16.mxu0 %v1782_v22 }
  0xf9   : > { %v512_v58 = vmax.f32 %v464_v53, 0.0  ;;  %v526_v0 = vpack.c.bf16 %v514_v54, %v513_v59  ;;  %v485_v4 = vadd.f32 %v1599_v55, %v2015_v29 }
  0xfa   : > { %v476_v60 = vpop.f32.mrf.mxu0 }
  0xfb   : > { %v525_v61 = vpack.c.bf16 %v512_v58, %v511_v57  ;;  %1664 = vmatpush3.bf16.msra.mxu1 %v1780_v48  ;;  %v477_v2 = vadd.f32 %v2015_v29, %v476_v60  ;;  %v517_v12 = vmax.f32 %v485_v4, 0.0  ;;  %1684 = vmatpush3.bf16.msra.mxu0 %v1782_v22 }
  0xfc   : > { %v1600_v1 = vpop.f32.mrf.mxu0 }
  0xfd   : > { %v488_v3 = vadd.f32 %v1600_v1, %v2015_v29  ;;  %1621 = vmatprep.mubr.msk.bf16.mxu1 %vm583_vm2, %v525_v61  ;;  %1649 = vmatprep.mubr.msk.bf16.mxu0 %vm583_vm2, %v525_v61  ;;  %v515_v10 = vmax.f32 %v477_v2, 0.0 }
  0xfe   : > { %v479_v5 = vpop.f32.mrf.mxu0  ;;  %1622 = vmatmul.mubr.msk.bf16.gmra.mxu1 %vm583_vm2, %v526_v0  ;;  %1650 = vmatmul.mubr.msk.bf16.gmra.mxu0 %vm583_vm2, %v526_v0 }
  0xff   : > { %v480_v7 = vadd.f32 %v2015_v29, %v479_v5  ;;  %v518_v9 = vmax.f32 %v488_v3, 0.0 }
 0x101   : > { %v516_v11 = vmax.f32 %v480_v7, 0.0  ;;  %v528_v16 = vpack.c.bf16 %v518_v9, %v517_v12 }
 0x103   : > { %v527_v13 = vpack.c.bf16 %v516_v11, %v515_v10 }
 0x105   : > { %1625 = vmatprep.mubr.msk.bf16.mxu1 %vm583_vm2, %v527_v13  ;;  %1653 = vmatprep.mubr.msk.bf16.mxu0 %vm583_vm2, %v527_v13 }
 0x106   : > { %1626 = vmatmul.mubr.msk.bf16.gmra.mxu1 %vm583_vm2, %v528_v16  ;;  %1654 = vmatmul.mubr.msk.bf16.gmra.mxu0 %vm583_vm2, %v528_v16 }
 0x107   : > { %1629 = vmatprep.mubr.msk.bf16.mxu1 %vm583_vm2, %v529_v14  ;;  %1657 = vmatprep.mubr.msk.bf16.mxu0 %vm583_vm2, %v529_v14 }
 0x10e   : > { %1630 = vmatmul.mubr.msk.bf16.gmra.mxu1 %vm583_vm2, %v530_v20  ;;  %1658 = vmatmul.mubr.msk.bf16.gmra.mxu0 %vm583_vm2, %v530_v20 }
 0x1b6   : > { %v1619_v23 = vpop.f32.mrf.mxu1  ;;  %v1647_v16 = vpop.f32.mrf.mxu0 }
 0x1b7   : > { %v651_v29 = vadd.f32 %v1619_v23, %v1382_v25 }
 0x1b8   : > { %v642_v24 = vpop.f32.mrf.mxu1  ;;  %v815_v17 = vpop.f32.mrf.mxu0 }
 0x1b9   : > { %v643_v27 = vadd.f32 %v1382_v25, %v642_v24  ;;  %v707_v36 = vmax.f32 %v651_v29, 0.0 }
 0x1ba   : > { %v1620_v26 = vpop.f32.mrf.mxu1  ;;  %v1648_v18 = vpop.f32.mrf.mxu0 }
 0x1bb   : > { %v654_v28 = vadd.f32 %v1620_v26, %v1382_v25  ;;  %v705_v34 = vmax.f32 %v643_v27, 0.0 }
 0x1bc   : > { %v645_v30 = vpop.f32.mrf.mxu1  ;;  %v818_v19 = vpop.f32.mrf.mxu0 }
 0x1bd   : > { %v646_v31 = vadd.f32 %v1382_v25, %v645_v30  ;;  %v708_v32 = vmax.f32 %v654_v28, 0.0  ;;  %v2072_v30 = vld [vmem:[%s2171_s6 + $0x2] ss:$0 sm:$0xff] }
 0x1be   : > { %v1623_v33 = vpop.f32.mrf.mxu1  ;;  %v1651_v20 = vpop.f32.mrf.mxu0 }
 0x1bf   : > { %v706_v35 = vmax.f32 %v646_v31, 0.0  ;;  %v722_v39 = vpack.c.bf16 %v708_v32, %v707_v36  ;;  %v667_v43 = vadd.f32 %v1623_v33, %v1382_v25 }
 0x1c0   : > { %v658_v37 = vpop.f32.mrf.mxu1  ;;  %v831_v21 = vpop.f32.mrf.mxu0 }
 0x1c1   : > { %v721_v38 = vpack.c.bf16 %v706_v35, %v705_v34  ;;  %v659_v41 = vadd.f32 %v1382_v25, %v658_v37  ;;  %v711_v50 = vmax.f32 %v667_v43, 0.0 }
 0x1c2   : > { %v1624_v40 = vpop.f32.mrf.mxu1  ;;  %v1652_v22 = vpop.f32.mrf.mxu0 }
 0x1c3   : > { %v670_v42 = vadd.f32 %v1624_v40, %v1382_v25  ;;  %1665 = vmatprep.mubr.msk.bf16.mxu1 %vm890_vm3, %v721_v38  ;;  %v709_v48 = vmax.f32 %v659_v41, 0.0 }
 0x1c4   : > { %v661_v44 = vpop.f32.mrf.mxu1  ;;  %1666 = vmatmul.mubr.msk.bf16.vlgmr.msra.gmra.mxu1 %vm890_vm3, %v722_v39  ;;  %v834_v23 = vpop.f32.mrf.mxu0 }
 0x1c5   : > { %v662_v45 = vadd.f32 %v1382_v25, %v661_v44  ;;  %v712_v46 = vmax.f32 %v670_v42, 0.0 }
 0x1c6   : > { %v1627_v47 = vpop.f32.mrf.mxu1 }
 0x1c7   : > { %v710_v49 = vmax.f32 %v662_v45, 0.0  ;;  %v724_v53 = vpack.c.bf16 %v712_v46, %v711_v50  ;;  %v683_v57 = vadd.f32 %v1627_v47, %v1382_v25 }
 0x1c8   : > { %v674_v51 = vpop.f32.mrf.mxu1 }
 0x1c9   : > { %v723_v52 = vpack.c.bf16 %v710_v49, %v709_v48  ;;  %v675_v55 = vadd.f32 %v1382_v25, %v674_v51  ;;  %v715_v0 = vmax.f32 %v683_v57, 0.0 }
 0x1ca   : > { %v1628_v54 = vpop.f32.mrf.mxu1 }
 0x1cb   : > { %v686_v56 = vadd.f32 %v1628_v54, %v1382_v25  ;;  %1669 = vmatprep.mubr.msk.bf16.mxu1 %vm890_vm3, %v723_v52  ;;  %v713_v62 = vmax.f32 %v675_v55, 0.0 }
 0x1cc   : > { %v677_v58 = vpop.f32.mrf.mxu1  ;;  %1670 = vmatmul.mubr.msk.bf16.gmra.mxu1 %vm890_vm3, %v724_v53 }
 0x1cd   : > { %v678_v59 = vadd.f32 %v1382_v25, %v677_v58  ;;  %v716_v60 = vmax.f32 %v686_v56, 0.0 }
 0x1ce   : > { %v1631_v61 = vpop.f32.mrf.mxu1 }
 0x1cf   : > { %v714_v63 = vmax.f32 %v678_v59, 0.0  ;;  %v726_v3 = vpack.c.bf16 %v716_v60, %v715_v0  ;;  %v699_v7 = vadd.f32 %v1631_v61, %v1382_v25 }
 0x1d0   : > { %v690_v1 = vpop.f32.mrf.mxu1 }
 0x1d1   : > { %v725_v2 = vpack.c.bf16 %v714_v63, %v713_v62  ;;  %v691_v5 = vadd.f32 %v1382_v25, %v690_v1  ;;  %v719_v13 = vmax.f32 %v699_v7, 0.0 }
 0x1d2   : > { %v1632_v4 = vpop.f32.mrf.mxu1 }
 0x1d3   : > { %v702_v6 = vadd.f32 %v1632_v4, %v1382_v25  ;;  %1673 = vmatprep.mubr.msk.bf16.mxu1 %vm890_vm3, %v725_v2  ;;  %v717_v11 = vmax.f32 %v691_v5, 0.0 }
 0x1d4   : > { %v693_v8 = vpop.f32.mrf.mxu1  ;;  %1674 = vmatmul.mubr.msk.bf16.gmra.mxu1 %vm890_vm3, %v726_v3 }
 0x1d5   : > { %v694_v9 = vadd.f32 %v1382_v25, %v693_v8  ;;  %v720_v10 = vmax.f32 %v702_v6, 0.0  ;;  %v1655_v25 = vpop.f32.mrf.mxu0 }
 0x1d7   : > { %v718_v12 = vmax.f32 %v694_v9, 0.0  ;;  %v728_v15 = vpack.c.bf16 %v720_v10, %v719_v13  ;;  %v847_v32 = vpop.f32.mrf.mxu0 }
 0x1d9   : > { %v727_v14 = vpack.c.bf16 %v718_v12, %v717_v11  ;;  %v1656_v40 = vpop.f32.mrf.mxu0 }
 0x1db   : > { %1677 = vmatprep.mubr.msk.bf16.mxu1 %vm890_vm3, %v727_v14  ;;  %v850_v51 = vpop.f32.mrf.mxu0 }
 0x1dc   : > { %1678 = vmatmul.mubr.msk.bf16.gmra.mxu1 %vm890_vm3, %v728_v15 }
 0x1dd   : > { %v1659_v60 = vpop.f32.mrf.mxu0 }
 0x1df   : > { %v863_v7 = vpop.f32.mrf.mxu0 }
 0x284   : > { %v1667_v24 = vpop.f32.mrf.mxu1 }
 0x285   : > { %v958_v28 = vadd.f32 %v1667_v24, %v1647_v16  ;;  %v1660_v16 = vpop.f32.mrf.mxu0 }
 0x286   : > { %v949_v26 = vpop.f32.mrf.mxu1 }
 0x287   : > { %v950_v27 = vadd.f32 %v949_v26, %v815_v17  ;;  %v1018_v37 = vadd.f32 %v2072_v30, %v958_v28 }
 0x288   : > { %v1668_v29 = vpop.f32.mrf.mxu1 }
 0x289   : > { %v961_v31 = vadd.f32 %v1668_v29, %v1648_v18  ;;  %v1016_v34 = vadd.f32 %v2072_v30, %v950_v27  ;;  %v1034_v46 = vmax.f32 %v1018_v37, 0.0  ;;  %v866_v27 = vpop.f32.mrf.mxu0 }
 0x28a   : > { %v952_v33 = vpop.f32.mrf.mxu1 }
 0x28b   : > { %v1019_v35 = vadd.f32 %v2072_v30, %v961_v31  ;;  %v953_v36 = vadd.f32 %v952_v33, %v818_v19  ;;  %v1032_v43 = vmax.f32 %v1016_v34, 0.0 }
 0x28c   : > { %v1671_v38 = vpop.f32.mrf.mxu1 }
 0x28d   : > { %v1017_v39 = vadd.f32 %v2072_v30, %v953_v36  ;;  %v1035_v41 = vmax.f32 %v1019_v35, 0.0  ;;  %v974_v47 = vadd.f32 %v1671_v38, %v1651_v20 }
 0x28e   : > { %v965_v42 = vpop.f32.mrf.mxu1 }
 0x28f   : > { %v1033_v44 = vmax.f32 %v1017_v39, 0.0  ;;  %v966_v45 = vadd.f32 %v965_v42, %v831_v21  ;;  %v1049_v52 = vpack.c.bf16 %v1035_v41, %v1034_v46  ;;  %v1022_v57 = vadd.f32 %v2072_v30, %v974_v47 }
 0x290   : > { %v1672_v48 = vpop.f32.mrf.mxu1 }
 0x291   : > { %v1048_v49 = vpack.c.bf16 %v1033_v44, %v1032_v43  ;;  %v977_v50 = vadd.f32 %v1672_v48, %v1652_v22  ;;  %v1020_v54 = vadd.f32 %v2072_v30, %v966_v45  ;;  %v1038_v2 = vmax.f32 %v1022_v57, 0.0  ;;  %v1422_v43 = vld [vmem:[%s2171_s6 + $0x3] ss:$0 sm:$0xff] }
 0x292   : > { %v968_v53 = vpop.f32.mrf.mxu1 }
 0x293   : > { %v1023_v55 = vadd.f32 %v2072_v30, %v977_v50  ;;  %v969_v56 = vadd.f32 %v968_v53, %v834_v23  ;;  %1685 = vmatprep.mubr.msk.bf16.mxu0 %vm890_vm3, %v1048_v49  ;;  %v1036_v63 = vmax.f32 %v1020_v54, 0.0 }
 0x294   : > { %v1675_v58 = vpop.f32.mrf.mxu1  ;;  %1686 = vmatmul.mubr.msk.bf16.vlgmr.msra.gmra.mxu0 %vm890_vm3, %v1049_v52 }
 0x295   : > { %v1021_v59 = vadd.f32 %v2072_v30, %v969_v56  ;;  %v1039_v61 = vmax.f32 %v1023_v55, 0.0  ;;  %v990_v3 = vadd.f32 %v1675_v58, %v1655_v25 }
 0x296   : > { %v981_v62 = vpop.f32.mrf.mxu1 }
 0x297   : > { %v1037_v0 = vmax.f32 %v1021_v59, 0.0  ;;  %v982_v1 = vadd.f32 %v981_v62, %v847_v32  ;;  %v1051_v8 = vpack.c.bf16 %v1039_v61, %v1038_v2  ;;  %v1026_v13 = vadd.f32 %v2072_v30, %v990_v3 }
 0x298   : > { %v1676_v4 = vpop.f32.mrf.mxu1 }
 0x299   : > { %v1050_v5 = vpack.c.bf16 %v1037_v0, %v1036_v63  ;;  %v993_v6 = vadd.f32 %v1676_v4, %v1656_v40  ;;  %v1024_v10 = vadd.f32 %v2072_v30, %v982_v1  ;;  %v1042_v22 = vmax.f32 %v1026_v13, 0.0 }
 0x29a   : > { %v984_v9 = vpop.f32.mrf.mxu1 }
 0x29b   : > { %v1027_v11 = vadd.f32 %v2072_v30, %v993_v6  ;;  %v985_v12 = vadd.f32 %v984_v9, %v850_v51  ;;  %1689 = vmatprep.mubr.msk.bf16.mxu0 %vm890_vm3, %v1050_v5  ;;  %v1040_v19 = vmax.f32 %v1024_v10, 0.0 }
 0x29c   : > { %v1679_v14 = vpop.f32.mrf.mxu1  ;;  %1690 = vmatmul.mubr.msk.bf16.gmra.mxu0 %vm890_vm3, %v1051_v8 }
 0x29d   : > { %v1025_v15 = vadd.f32 %v2072_v30, %v985_v12  ;;  %v1043_v17 = vmax.f32 %v1027_v11, 0.0  ;;  %v1006_v23 = vadd.f32 %v1679_v14, %v1659_v60 }
 0x29e   : > { %v997_v18 = vpop.f32.mrf.mxu1 }
 0x29f   : > { %v1041_v20 = vmax.f32 %v1025_v15, 0.0  ;;  %v998_v21 = vadd.f32 %v997_v18, %v863_v7  ;;  %v1053_v28 = vpack.c.bf16 %v1043_v17, %v1042_v22  ;;  %v1030_v34 = vadd.f32 %v2072_v30, %v1006_v23 }
 0x2a0   : > { %v1680_v24 = vpop.f32.mrf.mxu1 }
 0x2a1   : > { %v1052_v25 = vpack.c.bf16 %v1041_v20, %v1040_v19  ;;  %v1009_v26 = vadd.f32 %v1680_v24, %v1660_v16  ;;  %v1028_v31 = vadd.f32 %v2072_v30, %v998_v21  ;;  %v1046_v39 = vmax.f32 %v1030_v34, 0.0 }
 0x2a2   : > { %v1000_v29 = vpop.f32.mrf.mxu1 }
 0x2a3   : > { %v1031_v32 = vadd.f32 %v2072_v30, %v1009_v26  ;;  %v1001_v33 = vadd.f32 %v1000_v29, %v866_v27  ;;  %1693 = vmatprep.mubr.msk.bf16.mxu0 %vm890_vm3, %v1052_v25  ;;  %v1044_v37 = vmax.f32 %v1028_v31, 0.0 }
 0x2a4   : > { %1694 = vmatmul.mubr.msk.bf16.gmra.mxu0 %vm890_vm3, %v1053_v28 }
 0x2a5   : > { %v1029_v35 = vadd.f32 %v2072_v30, %v1001_v33  ;;  %v1047_v36 = vmax.f32 %v1031_v32, 0.0 }
 0x2a7   : > { %v1045_v38 = vmax.f32 %v1029_v35, 0.0  ;;  %v1055_v41 = vpack.c.bf16 %v1047_v36, %v1046_v39 }
 0x2a9   : > { %v1054_v40 = vpack.c.bf16 %v1045_v38, %v1044_v37 }
 0x2ab   : > { %1697 = vmatprep.mubr.msk.bf16.mxu0 %vm890_vm3, %v1054_v40 }
 0x2ac   : > { %1698 = vmatmul.mubr.msk.bf16.gmra.mxu0 %vm890_vm3, %v1055_v41 }
 0x354   : > { %v1687_v42 = vpop.f32.mrf.mxu0 }
 0x355   : > { %v1143_v45 = vadd.f32 %v1687_v42, %v1422_v43 }
 0x356   : > { %v1134_v44 = vpop.f32.mrf.mxu0 }
 0x357   : > { %v1135_v48 = vadd.f32 %v1422_v43, %v1134_v44 }
 0x358   : > { %v1688_v30 = vpop.f32.mrf.mxu0 }
 0x359   : > { %v1146_v46 = vadd.f32 %v1688_v30, %v1422_v43 }
 0x35a   : > { %v1137_v47 = vpop.f32.mrf.mxu0 }
 0x35b   : > { %v1479_v49 = vpack.c.bf16 %v1146_v46, %v1143_v45  ;;  %v1138_v50 = vadd.f32 %v1422_v43, %v1137_v47 }
 0x35c   : > { %v1691_v51 = vpop.f32.mrf.mxu0 }
 0x35d   : > { %1511 = vst [vmem:[%s2104_s15 + $0x8] sm:$0xff] %v1479_v49   ;;  %v1474_v52 = vpack.c.bf16 %v1138_v50, %v1135_v48  ;;  %v1159_v55 = vadd.f32 %v1691_v51, %v1422_v43 }
 0x35e   : > { %v1150_v53 = vpop.f32.mrf.mxu0 }
 0x35f   : > { %1475 = vst [vmem:[%s2104_s15] sm:$0xff] %v1474_v52   ;;  %v1151_v58 = vadd.f32 %v1422_v43, %v1150_v53 }
 0x360   : > { %v1692_v54 = vpop.f32.mrf.mxu0 }
 0x361   : > { %v1162_v56 = vadd.f32 %v1692_v54, %v1422_v43 }
 0x362   : > { %v1153_v57 = vpop.f32.mrf.mxu0 }
 0x363   : > { %v1489_v59 = vpack.c.bf16 %v1162_v56, %v1159_v55  ;;  %v1154_v60 = vadd.f32 %v1422_v43, %v1153_v57 }
 0x364   : > { %v1695_v61 = vpop.f32.mrf.mxu0 }
 0x365   : > { %1513 = vst [vmem:[%s2104_s15 + $0x18] sm:$0xff] %v1489_v59   ;;  %v1484_v62 = vpack.c.bf16 %v1154_v60, %v1151_v58  ;;  %v1175_v1 = vadd.f32 %v1695_v61, %v1422_v43 }
 0x366   : > { %v1166_v63 = vpop.f32.mrf.mxu0 }
 0x367   : > { %1512 = vst [vmem:[%s2104_s15 + $0x10] sm:$0xff] %v1484_v62   ;;  %v1167_v4 = vadd.f32 %v1422_v43, %v1166_v63 }
 0x368   : > { %v1696_v0 = vpop.f32.mrf.mxu0 }
 0x369   : > { %v1178_v2 = vadd.f32 %v1696_v0, %v1422_v43 }
 0x36a   : > { %v1169_v3 = vpop.f32.mrf.mxu0 }
 0x36b   : > { %v1499_v5 = vpack.c.bf16 %v1178_v2, %v1175_v1  ;;  %v1170_v6 = vadd.f32 %v1422_v43, %v1169_v3 }
 0x36c   : > { %v1699_v7 = vpop.f32.mrf.mxu0 }
 0x36d   : > { %1515 = vst [vmem:[%s2104_s15 + $0x28] sm:$0xff] %v1499_v5   ;;  %v1494_v8 = vpack.c.bf16 %v1170_v6, %v1167_v4  ;;  %v1191_v11 = vadd.f32 %v1699_v7, %v1422_v43 }
 0x36e   : > { %v1182_v9 = vpop.f32.mrf.mxu0 }
 0x36f   : > { %1514 = vst [vmem:[%s2104_s15 + $0x20] sm:$0xff] %v1494_v8   ;;  %v1183_v14 = vadd.f32 %v1422_v43, %v1182_v9 }
 0x370   : > { %v1700_v10 = vpop.f32.mrf.mxu0 }
 0x371   : > { %v1194_v12 = vadd.f32 %v1700_v10, %v1422_v43 }
 0x372   : > { %v1185_v13 = vpop.f32.mrf.mxu0 }
 0x373   : > { %v1509_v15 = vpack.c.bf16 %v1194_v12, %v1191_v11  ;;  %v1186_v16 = vadd.f32 %v1422_v43, %v1185_v13 }
 0x375   : > { %1517 = vst [vmem:[%s2104_s15 + $0x38] sm:$0xff] %v1509_v15   ;;  %v1504_v17 = vpack.c.bf16 %v1186_v16, %v1183_v14 }
 0x377   : > { %1516 = vst [vmem:[%s2104_s15 + $0x30] sm:$0xff] %v1504_v17  }
 0x378   : > { %1796 = shalt.err (!%p1793_p3)
}
 0x379   : > { %s1797_s29 = scalar_lea.hbm %s2117_s8, 1024  ;;  %s1801_s14 = scalar_lea.hbm %s2172_s7, 2048 }
 0x37a   : > { %p1798_p4 = scmp.ne.s32.totalorder %s2117_s8, %s1797_s29  ;;  %p1802_p9 = scmp.lt.s32.totalorder %s2117_s8, %s2172_s7 }
 0x37b   : > { %p1803_p10 = scmp.lt.s32.totalorder %s1801_s14, %s1797_s29 }
 0x37c   : > { %p1799_p7 = pnand %p1798_p4, %p1926_p5 }
 0x37d   : > { %p1804_p11 = por %p1803_p10, %p1802_p9 }
 0x37e   : > { %p1800_p8 = pneg %p1799_p7 }
 0x380   : > { %p1805_p12 = pnand %p1804_p11, %p1800_p8 }
 0x382   : > { %1808 = shalt.err (!%p1805_p12)
}
 0x383   : > { %s1846_s18 = smov 64   ;;  %s1847_s19 = smov 4  }
 0x384   : > { %1713 = dma.vmem_to_hbm [thread:$0]  (%p1926_p5), %s2119_s17, 1024, %s2117_s8, %s2125_s28, %s1846_s18, %s1846_s18, %s1847_s19  }
 0x385 PF: > { %p1719_p13 = scmp.ge.s32.totalorder %s1843_s27, 2  ;;  %s1306_s20 = sand.u32 1, %s1831_s24  }
 0x386   : > { %s1307_s21 = scalar_lea.sflag [#allocation3], %s1306_s20 }
 0x387   : > { %p1716_p0 = pnand %p1719_p13, %p1930_p6 }
 0x389   : > { %p1717_p1 = pneg %p1716_p0 }
 0x38b   : > { %1826 = dma.done.wait (%p1717_p1), %s1307_s21, 1024  }
 0x38c   : > { %1828 = vsyncadd (%p1717_p1), %s1307_s21, 4294966272  ;;  %p17_p2 = scmp.ge.s32.totalorder %s1913_s30, 4   ;;  %s2175_s24 = smov %s1835_s25 }
 0x38d   : > { %s2176_s25 = smov %s1839_s26  ;;  %s2177_s26 = smov %s1924_s10 }
 0x38e   : > { %s2178_s27 = smov %s1913_s30  ;;  %19 = sbr.rel (!%p17_p2) target bundleno = 3 (0x3), region = 83 }
 0x393   :  { %1312 = vsyncpa [#allocation3], 1 }
 0x394   :  { %1314 = vsyncpa [#allocation3 + $0x1], 1 }

</bundles_post_ra>
